<compile_context>
chip_gen: v6e
topology: v6e:2x2x1
jax: 0.10.0
libtpu: 0.0.40
codegen_flags: <defaults>
</compile_context>

<pallas_src>
import functools

import jax
import jax.numpy as jnp
from jax.experimental import pallas as pl
from jax.experimental.pallas import tpu as pltpu

EXPAND = 1
_LANE_TILE_MAX = 65536          # lanes (softmax groups) per grid step
_MIN_GROUPS_FOR_PALLAS = 4096   # below this the fused XLA path wins


def _round_up(x, m):
    return ((x + m - 1) // m) * m


def _loss_kernel(pre_ref, tar_ref, out_ref, acc_ref, *,
                 n, lane_tile, tiles_per_split):
    # pre_ref / tar_ref: (4, lane_tile) f32.  Sublanes = the 4 logits of one
    # softmax group, lanes = flattened (batch*6) groups -> every VPU/EUP op is
    # lane-dense and the softmax reduce spans 4 sublanes (cheap), not 128 lanes.
    c = pl.program_id(0)
    i = pl.program_id(1)

    @pl.when(i == 0)
    def _init():
        acc_ref[...] = jnp.zeros_like(acc_ref)

    x = pre_ref[...]
    m = jnp.max(x, axis=0, keepdims=True)          # (1, T) sublane reduce
    e = jnp.exp(x - m)                             # EUP
    s = jnp.sum(e, axis=0, keepdims=True)          # (1, T)
    soft = e * ((3.0 * EXPAND) / s)                # 3 * expand * softmax
    d = soft - tar_ref[...]
    dd = d * d

    # Number of valid lanes (groups) in this tile.  Middle tiles: rem >= tile
    # (unmasked, zero extra cost).  Tail tile: 0 < rem < tile.  Phantom tiles
    # (from the 2-way split rounding; index_map-clamped to real data): rem <= 0.
    rem = n - (c * tiles_per_split + i) * lane_tile

    @pl.when(rem >= lane_tile)
    def _acc_full():
        acc_ref[...] += dd

    @pl.when(rem < lane_tile)
    def _acc_tail():
        lane = jax.lax.broadcasted_iota(jnp.int32, (1, lane_tile), 1)
        acc_ref[...] += jnp.where(lane < rem, dd, 0.0)

    # One full reduction per split (not per tile); lane-dense (1,1,128) store.
    @pl.when(i == pl.num_programs(1) - 1)
    def _finalize():
        out_ref[...] = jnp.broadcast_to(jnp.sum(acc_ref[...]), out_ref.shape)


def _loss_pallas_impl(pre, tar, lane_tile_max=_LANE_TILE_MAX):
    B = pre.shape[0]
    n = B * 6                                       # number of softmax groups

    # Lane-dense layout: group axis (4) on sublanes, batch*6 groups on lanes.
    # Under jit the slice+reshape+transpose fuses into a single copy per input;
    # there is no pad pass (tail handled in-kernel).
    pre24 = (pre[:, :24].astype(jnp.float32)
             .reshape(B, 6, 4).transpose(2, 0, 1).reshape(4, n))
    tar24 = (tar[:, :24].astype(jnp.float32)
             .reshape(B, 6, 4).transpose(2, 0, 1).reshape(4, n))

    lane_tile = min(lane_tile_max, _round_up(n, 128))
    total_tiles = pl.cdiv(n, lane_tile)
    # 2-way split: shards the batch across both TensorCores on multi-TC chips
    # (v7x / megacore); on single-TC chips it just runs sequentially and costs
    # at most one fully-masked phantom tile.
    nsplit = 2 if total_tiles >= 2 else 1
    tiles_per_split = pl.cdiv(total_tiles, nsplit)

    def idx_map(c, i):
        t = c * tiles_per_split + i
        # Clamp phantom tiles to real data; their contribution is masked to 0.
        return (0, jnp.minimum(t, total_tiles - 1))

    kernel = functools.partial(_loss_kernel, n=n, lane_tile=lane_tile,
                               tiles_per_split=tiles_per_split)

    partials = pl.pallas_call(
        kernel,
        out_shape=jax.ShapeDtypeStruct((nsplit, 1, 128), jnp.float32),
        grid_spec=pltpu.PrefetchScalarGridSpec(
            num_scalar_prefetch=0,
            grid=(nsplit, tiles_per_split),
            in_specs=[
                pl.BlockSpec((4, lane_tile), idx_map),
                pl.BlockSpec((4, lane_tile), idx_map),
            ],
            out_specs=pl.BlockSpec((1, 1, 128), lambda c, i: (c, 0, 0)),
            scratch_shapes=[pltpu.VMEM((4, lane_tile), jnp.float32)],
        ),
        compiler_params=pltpu.CompilerParams(
            dimension_semantics=("parallel", "arbitrary"),
            vmem_limit_bytes=32 * 1024 * 1024),
    )(pre24, tar24)

    # Sum per-split partial sums of squared errors; /24 = per-sample mean.
    return jnp.sum(partials[:, 0, 0]) * (1.0 / 24.0)


def _loss_ref_impl(pre, tar):
    """Pure-JAX/XLA expression mirroring the PyTorch loop."""
    B = pre.shape[0]
    groups = pre[:, :24].astype(jnp.float32).reshape(B, 6, 4)
    soft = 3.0 * EXPAND * jax.nn.softmax(groups, axis=-1)
    d = soft.reshape(B, 24) - tar[:, :24].astype(jnp.float32)
    return jnp.sum(jnp.mean(d * d, axis=-1))


@jax.jit
def loss_soft_add(pre, tar):
    """Auto-dispatching entry point: tiny batches take the fused XLA path
    (pallas_call fixed overhead dominates), large batches take the kernel."""
    if pre.shape[0] * 6 < _MIN_GROUPS_FOR_PALLAS:
        return _loss_ref_impl(pre, tar)
    return _loss_pallas_impl(pre, tar)


@functools.partial(jax.jit, static_argnames=("lane_tile_max",))
def loss_soft_add_pallas(pre, tar, lane_tile_max=_LANE_TILE_MAX):
    """Always-Pallas entry point (used by the test so the kernel is exercised)."""
    return _loss_pallas_impl(pre, tar, lane_tile_max)


if __name__ == "__main__":
    key = jax.random.PRNGKey(0)
    k1, k2 = jax.random.split(key)

    # Small shapes consistent with the module: (batch, 25) logits / targets.
    B = 8
    pre = jax.random.normal(k1, (B, 25), dtype=jnp.float32)
    tar = jax.random.normal(k2, (B, 25), dtype=jnp.float32)

    loss = loss_soft_add_pallas(pre, tar)
    jax.block_until_ready(loss)
    ref = _loss_ref_impl(pre, tar)
    assert jnp.allclose(loss, ref, rtol=1e-5, atol=1e-5), (loss, ref)

    # Exercise the multi-tile / 2-way-split / tail-mask / phantom-tile code paths
    # with a deliberately tiny lane tile (data stays small).
    k3, k4 = jax.random.split(k2)
    B2 = 100
    pre2 = jax.random.normal(k3, (B2, 25), dtype=jnp.float32)
    tar2 = jax.random.normal(k4, (B2, 25), dtype=jnp.float32)
    loss2 = loss_soft_add_pallas(pre2, tar2, lane_tile_max=128)
    jax.block_until_ready(loss2)
    ref2 = _loss_ref_impl(pre2, tar2)
    assert jnp.allclose(loss2, ref2, rtol=1e-5, atol=1e-5), (loss2, ref2)

    print("KERNEL_OK")
</pallas_src>

<mosaic_0001>
module attributes {stable_mosaic.version = 11 : i64} {
  func.func @_loss_kernel(%arg0: i32, %arg1: i32, %arg2: memref<4x128xf32, #tpu.memory_space<vmem>>, %arg3: memref<4x128xf32, #tpu.memory_space<vmem>>, %arg4: memref<1x1x128xf32, #tpu.memory_space<vmem>>, %arg5: memref<4x128xf32, #tpu.memory_space<vmem>>) attributes {dimension_semantics = [#tpu.dimension_semantics<parallel>, #tpu.dimension_semantics<arbitrary>], iteration_bounds = array<i64: 1, 1>, scalar_prefetch = 0 : i64, scratch_operands = 1 : i64, tpu.core_type = #tpu.core_type<tc>, window_params = [{transform_indices = @transform_0, window_bounds = array<i64: 4, 128>}, {transform_indices = @transform_1, window_bounds = array<i64: 4, 128>}, {transform_indices = @transform_2, window_bounds = array<i64: 1, 1, 128>}]} {
    %c0_i32 = arith.constant 0 : i32
    %0 = arith.cmpi eq, %arg1, %c0_i32 : i32
    %1 = arith.extui %0 : i1 to i32
    %c0_i32_0 = arith.constant 0 : i32
    %2 = arith.cmpi ne, %1, %c0_i32_0 : i32
    scf.if %2 {
      %cst_12 = arith.constant 0.000000e+00 : f32
      %31 = vector.broadcast %cst_12 : f32 to vector<4x128xf32>
      %c0_13 = arith.constant 0 : index
      %c0_14 = arith.constant 0 : index
      %32 = vector.load %arg5[%c0_13, %c0_14] : memref<4x128xf32, #tpu.memory_space<vmem>>, vector<4x128xf32>
      tpu.vector_store %arg5[%c0_13, %c0_14], %31 {strides = array<i32>} : memref<4x128xf32, #tpu.memory_space<vmem>>, vector<4x128xf32>,
    } else {
    }
    %c0 = arith.constant 0 : index
    %c0_1 = arith.constant 0 : index
    %3 = vector.load %arg2[%c0, %c0_1] : memref<4x128xf32, #tpu.memory_space<vmem>>, vector<4x128xf32>
    %cst = arith.constant dense<0xFF800000> : vector<128xf32>
    %4 = vector.multi_reduction <maximumf>, %3, %cst [0] : vector<4x128xf32> to vector<128xf32>
    %5 = vector.shape_cast %4 : vector<128xf32> to vector<1x128xf32>
    %6 = vector.broadcast %5 : vector<1x128xf32> to vector<4x128xf32>
    %7 = arith.subf %3, %6 : vector<4x128xf32>
    %8 = math.exp %7 : vector<4x128xf32>
    %cst_2 = arith.constant dense<0.000000e+00> : vector<128xf32>
    %9 = vector.multi_reduction <add>, %8, %cst_2 [0] : vector<4x128xf32> to vector<128xf32>
    %10 = vector.shape_cast %9 : vector<128xf32> to vector<1x128xf32>
    %cst_3 = arith.constant 3.000000e+00 : f32
    %11 = vector.broadcast %cst_3 : f32 to vector<1x128xf32>
    %12 = arith.divf %11, %10 : vector<1x128xf32>
    %13 = vector.broadcast %12 : vector<1x128xf32> to vector<4x128xf32>
    %14 = arith.mulf %8, %13 : vector<4x128xf32>
    %c0_4 = arith.constant 0 : index
    %c0_5 = arith.constant 0 : index
    %15 = vector.load %arg3[%c0_4, %c0_5] : memref<4x128xf32, #tpu.memory_space<vmem>>, vector<4x128xf32>
    %16 = arith.subf %14, %15 : vector<4x128xf32>
    %17 = arith.mulf %16, %16 : vector<4x128xf32>
    %c1_i32 = arith.constant 1 : i32
    %18 = arith.muli %arg0, %c1_i32 : i32
    %19 = arith.addi %18, %arg1 : i32
    %c128_i32 = arith.constant 128 : i32
    %20 = arith.muli %19, %c128_i32 : i32
    %c48_i32 = arith.constant 48 : i32
    %21 = arith.subi %c48_i32, %20 : i32
    %c128_i32_6 = arith.constant 128 : i32
    %22 = arith.cmpi sge, %21, %c128_i32_6 : i32
    %23 = arith.extui %22 : i1 to i32
    %c0_i32_7 = arith.constant 0 : i32
    %24 = arith.cmpi ne, %23, %c0_i32_7 : i32
    scf.if %24 {
      %c0_12 = arith.constant 0 : index
      %c0_13 = arith.constant 0 : index
      %31 = vector.load %arg5[%c0_12, %c0_13] : memref<4x128xf32, #tpu.memory_space<vmem>>, vector<4x128xf32>
      %32 = arith.addf %31, %17 : vector<4x128xf32>
      %c0_14 = arith.constant 0 : index
      %c0_15 = arith.constant 0 : index
      %33 = vector.load %arg5[%c0_14, %c0_15] : memref<4x128xf32, #tpu.memory_space<vmem>>, vector<4x128xf32>
      tpu.vector_store %arg5[%c0_14, %c0_15], %32 {strides = array<i32>} : memref<4x128xf32, #tpu.memory_space<vmem>>, vector<4x128xf32>,
    } else {
    }
    %c128_i32_8 = arith.constant 128 : i32
    %25 = arith.cmpi slt, %21, %c128_i32_8 : i32
    %26 = arith.extui %25 : i1 to i32
    %c0_i32_9 = arith.constant 0 : i32
    %27 = arith.cmpi ne, %26, %c0_i32_9 : i32
    scf.if %27 {
      %31 = tpu.iota {dimensions = array<i32: 1>} : vector<1x128xi32>
      %c0_12 = arith.constant 0 : index
      %c0_13 = arith.constant 0 : index
      %32 = vector.load %arg5[%c0_12, %c0_13] : memref<4x128xf32, #tpu.memory_space<vmem>>, vector<4x128xf32>
      %33 = vector.broadcast %21 : i32 to vector<1x128xi32>
      %34 = arith.cmpi slt, %31, %33 : vector<1x128xi32>
      %cst_14 = arith.constant 0.000000e+00 : f32
      %35 = vector.shape_cast %34 : vector<1x128xi1> to vector<1x128xi1>
      %36 = vector.broadcast %35 : vector<1x128xi1> to vector<4x128xi1>
      %37 = vector.broadcast %cst_14 : f32 to vector<4x128xf32>
      %38 = arith.select %36, %17, %37 : vector<4x128xi1>, vector<4x128xf32>
      %39 = arith.addf %32, %38 : vector<4x128xf32>
      %c0_15 = arith.constant 0 : index
      %c0_16 = arith.constant 0 : index
      %40 = vector.load %arg5[%c0_15, %c0_16] : memref<4x128xf32, #tpu.memory_space<vmem>>, vector<4x128xf32>
      tpu.vector_store %arg5[%c0_15, %c0_16], %39 {strides = array<i32>} : memref<4x128xf32, #tpu.memory_space<vmem>>, vector<4x128xf32>,
    } else {
    }
    %c0_i32_10 = arith.constant 0 : i32
    %28 = arith.cmpi eq, %arg1, %c0_i32_10 : i32
    %29 = arith.extui %28 : i1 to i32
    %c0_i32_11 = arith.constant 0 : i32
    %30 = arith.cmpi ne, %29, %c0_i32_11 : i32
    scf.if %30 {
      %c0_12 = arith.constant 0 : index
      %c0_13 = arith.constant 0 : index
      %31 = vector.load %arg5[%c0_12, %c0_13] : memref<4x128xf32, #tpu.memory_space<vmem>>, vector<4x128xf32>
      %32 = vector.shape_cast %31 : vector<4x128xf32> to vector<1x4x128xf32>
      %cst_14 = arith.constant dense<0.000000e+00> : vector<1xf32>
      %33 = vector.multi_reduction <add>, %32, %cst_14 [1, 2] : vector<1x4x128xf32> to vector<1xf32>
      %34 = vector.shape_cast %33 : vector<1xf32> to vector<1x1x1xf32>
      %35 = vector.extract %34[0, 0, 0] : f32 from vector<1x1x1xf32>
      %36 = vector.broadcast %35 : f32 to vector<1x1x128xf32>
      %c0_15 = arith.constant 0 : index
      %c0_16 = arith.constant 0 : index
      %c0_17 = arith.constant 0 : index
      %37 = vector.load %arg4[%c0_15, %c0_16, %c0_17] : memref<1x1x128xf32, #tpu.memory_space<vmem>>, vector<1x1x128xf32>
      tpu.vector_store %arg4[%c0_15, %c0_16, %c0_17], %36 {strides = array<i32>} : memref<1x1x128xf32, #tpu.memory_space<vmem>>, vector<1x1x128xf32>,
    } else {
    }
    return
  }
  func.func @transform_0(%arg0: i32, %arg1: i32) -> (i32, i32) {
    %c1_i32 = arith.constant 1 : i32
    %0 = arith.muli %arg0, %c1_i32 : i32
    %1 = arith.addi %0, %arg1 : i32
    %c0_i32 = arith.constant 0 : i32
    %2 = arith.minsi %1, %c0_i32 : i32
    %c0_i32_0 = arith.constant 0 : i32
    %c0_i32_1 = arith.constant 0 : i32
    return %c0_i32_0, %2 : i32, i32
  }
  func.func @transform_1(%arg0: i32, %arg1: i32) -> (i32, i32) {
    %c1_i32 = arith.constant 1 : i32
    %0 = arith.muli %arg0, %c1_i32 : i32
    %1 = arith.addi %0, %arg1 : i32
    %c0_i32 = arith.constant 0 : i32
    %2 = arith.minsi %1, %c0_i32 : i32
    %c0_i32_0 = arith.constant 0 : i32
    %c0_i32_1 = arith.constant 0 : i32
    return %c0_i32_0, %2 : i32, i32
  }
  func.func @transform_2(%arg0: i32, %arg1: i32) -> (i32, i32, i32) {
    %c0_i32 = arith.constant 0 : i32
    %c0_i32_0 = arith.constant 0 : i32
    %c0_i32_1 = arith.constant 0 : i32
    return %arg0, %c0_i32, %c0_i32_0 : i32, i32, i32
  }
}

</mosaic_0001>

<bundles_post_ra>
// kernel: loss_soft_add_pallas.1
= control target key start
LH: loop header
LB: loop body
LE: loop exit
PB: predicated region body
PF: predicated region fallthrough
CT: control target
= control target key end

     0   :  { %vm71_vm0 = vcmask 1043456   ;;  %v158_v0 = vmov 0.0   ;;  %v109_v19 = vlaneseq  ;;  %s186_s0 = inlined_call_operand.vmem [shape: f32[4,48], index: 0, kind: input, shape index: {}]   ;;  %s187_s1 = inlined_call_operand.vmem [shape: f32[4,48], index: 1, kind: input, shape index: {}]   ;;  %s188_s2 = inlined_call_operand.vmem [shape: f32[1,1,128], index: 2, kind: output, shape index: {}]  }
   0x1   :  { %69 = vst [vmem:[#allocation2] sm:$0xf] %v158_v0  ;;  %v70_v1 = vld [vmem:[%s186_s0] sm:$0xf] }
   0x2   :  { %v72_v2 = vsel %vm71_vm0, %v70_v1, -inf  ;;  %v92_v22 = vld [vmem:[%s187_s1] sm:$0xf]  ;;  %v110_v23 = vand.u32 127, %v109_v19 }
   0x3   :  { %v73_v3 = vrot.slane %v72_v2, 4 }
   0x4   :  { %vm113_vm1 = vcmp.lt.s32.totalorder %v110_v23, 48 }
   0x5   :  { %v74_v4 = vmax.f32 %v72_v2, %v73_v3 }
   0x7   :  { %v75_v5 = vrot.slane %v74_v4, 2 }
   0x8   :  { %v111_v27 = vld [vmem:[#allocation2] sm:$0xf] }
   0x9   :  { %v76_v6 = vmax.f32 %v74_v4, %v75_v5 }
   0xb   :  { %v77_v7 = vrot.slane %v76_v6, 1 }
   0xd   :  { %v78_v8 = vmax.f32 %v76_v6, %v77_v7 }
   0xf   :  { %v79_v9 = vsub.f32 %v70_v1, %v78_v8 }
  0x11   :  { %v80_v10 = vmul.f32 1.442695, %v79_v9 }
  0x13   :  { %154 = vpow2.f32 %v80_v10 }
  0x20   :  { %v155_v11 = vpop.eup %154 }
  0x21   :  { %v82_v12 = vsel %vm71_vm0, %v155_v11, 0.0 }
  0x22   :  { %v83_v13 = vrot.slane %v82_v12, 4 }
  0x24   :  { %v84_v14 = vadd.f32 %v83_v13, %v82_v12 }
  0x26   :  { %v85_v15 = vrot.slane %v84_v14, 2 }
  0x28   :  { %v86_v16 = vadd.f32 %v85_v15, %v84_v14 }
  0x2a   :  { %v87_v17 = vrot.slane %v86_v16, 1 }
  0x2c   :  { %v88_v18 = vadd.f32 %v87_v17, %v86_v16 }
  0x2e   :  { %156 = vrcp.f32 %v88_v18 }
  0x3b   :  { %v157_v20 = vpop.eup %156 }
  0x3c   :  { %v90_v21 = vmul.f32 3.0, %v157_v20 }
  0x3e   :  { %v91_v24 = vmul.f32 %v155_v11, %v90_v21 }
  0x40   :  { %v93_v25 = vsub.f32 %v91_v24, %v92_v22 }
  0x42   :  { %v94_v26 = vmul.f32 %v93_v25, %v93_v25 }
  0x44   :  { %v116_v28 = vsel %vm113_vm1, %v94_v26, 0.0 }
  0x45   :  { %v117_v29 = vadd.f32 %v116_v28, %v111_v27 }
  0x47   :  { %118 = vst [vmem:[#allocation2] sm:$0xf] %v117_v29 }
  0x4e   :  { %v122_v30 = vld [vmem:[#allocation2] sm:$0xf] }
  0x4f   :  { %v123_v31 = vsel %vm71_vm0, %v122_v30, 0.0 }
  0x50   :  { %124 = vadd.xlane.f32.xlu0 %v123_v31 }
  0xd9   :  { %v125_v32 = vpop.xlane.xlu0 %124 }
  0xda   :  { %v126_v33 = vrot.slane %v125_v32, 4 }
  0xdc   :  { %v127_v34 = vadd.f32 %v126_v33, %v125_v32 }
  0xde   :  { %v128_v35 = vrot.slane %v127_v34, 2 }
  0xe0   :  { %v129_v36 = vadd.f32 %v128_v35, %v127_v34 }
  0xe2   :  { %v130_v37 = vrot.slane %v129_v36, 1 }
  0xe4   :  { %v131_v38 = vadd.f32 %v130_v37, %v129_v36 }
  0xe6   :  { %151 = vpush %v131_v38 }
 0x117   :  { %s152_s1 = spop %151 }
 0x118   :  { %v133_v39 = vstv %s152_s1 }
 0x119   :  { %134 = vst [vmem:[%s188_s2] sm:$0x1] %v133_v39 }

</bundles_post_ra>
